<compile_context>
chip_gen: v7x
topology: tpu7x:2x2x1
jax: 0.10.0
libtpu: 0.0.40
codegen_flags: <defaults>
</compile_context>

<pallas_src>
import numpy as np
import jax
import jax.numpy as jnp
from jax.experimental import pallas as pl
from jax.experimental.pallas import tpu as pltpu


def _rope_kernel(fmask_ref, rot_ref, pos_ref, x_ref, o_ref):
    # fmask_ref: (P, LW)  f32   row i = per-lane RoPE freq for packed token i, 0 elsewhere
    # rot_ref:   (LW, LW) bf16  signed within-pair swap matrix (entries in {0, +1, -1})
    # pos_ref:   (TM, P)  f32   token positions of the P tokens in each packed row
    # x_ref/o_ref: (TM, LW)     interleaved RoPE input / output (lane dense)
    n_pack = pos_ref.shape[1]

    # Per-lane angles: ang[r, l] = position(token owning lane l) * freq(l).
    # P broadcast-multiplies (VPU); the masked-freq rows stay resident in VMEM.
    ang = pos_ref[:, 0:1] * fmask_ref[0:1, :]
    for i in range(1, n_pack):
        ang = ang + pos_ref[:, i:i + 1] * fmask_ref[i:i + 1, :]
    c = jnp.cos(ang)          # EUP
    s = jnp.sin(ang)          # EUP

    x32 = x_ref[...].astype(jnp.float32)

    # Signed pair swap on the (idle) MXU: x_sw[2i] = -x[2i+1], x_sw[2i+1] = +x[2i].
    rot = rot_ref[...]
    x_hi = x32.astype(jnp.bfloat16)
    x_sw = jnp.dot(x_hi, rot, preferred_element_type=jnp.float32)
    if np.dtype(x_ref.dtype).itemsize > 2:
        # Second bf16 limb: the one-hot +/-1 matmul is exact per limb, so the swap
        # recovers f32 inputs to ~|x| * 2^-16 through the bf16 MXU.
        x_lo = (x32 - x_hi.astype(jnp.float32)).astype(jnp.bfloat16)
        x_sw = x_sw + jnp.dot(x_lo, rot, preferred_element_type=jnp.float32)

    o_ref[...] = (x32 * c + x_sw * s).astype(o_ref.dtype)


def _rope_tables(theta: float, d_k: int, lane_w: int):
    """Host-side constants: per-group masked per-lane freqs and the signed swap matrix."""
    n_pack = lane_w // d_k
    lane = np.arange(lane_w)
    within = lane % d_k
    # pair index i uses freq = theta ** (-(2i / d_k)), shared by lanes 2i and 2i+1.
    freqs = (1.0 / (theta ** ((2.0 * (within // 2)) / d_k))).astype(np.float32)
    group = lane // d_k
    fmask = np.zeros((n_pack, lane_w), np.float32)
    for i in range(n_pack):
        sel = group == i
        fmask[i, sel] = freqs[sel]

    even = np.arange(0, lane_w, 2)
    rot = np.zeros((lane_w, lane_w), np.float32)
    rot[even + 1, even] = -1.0     # out[2i]   gets -x[2i+1]
    rot[even, even + 1] = 1.0      # out[2i+1] gets +x[2i]
    return jnp.asarray(fmask), jnp.asarray(rot, dtype=jnp.bfloat16)


def rope_forward(x, token_positions, *, theta: float, d_k: int, max_seq_len: int,
                 block_rows: int = 2048):
    """x: (..., S, d_k); token_positions: (..., S) int. Returns same shape/dtype as x."""
    assert x.shape[-1] == d_k and d_k % 2 == 0
    assert max_seq_len < (1 << 24)   # positions carried in f32 stay exact below 2^24
    assert block_rows % 8 == 0

    orig_shape = x.shape
    S = x.shape[-2]
    batch_shape = x.shape[:-2]
    B = int(np.prod(batch_shape)) if batch_shape else 1
    rows = B * S

    # Pack P whole tokens per dense 128-lane row when d_k divides 128;
    # otherwise fall back to d_k-wide rows (full-extent blocks are still legal).
    if d_k <= 128 and 128 % d_k == 0:
        P = 128 // d_k
    else:
        P = 1
    LW = P * d_k

    pos = jnp.broadcast_to(token_positions, batch_shape + (S,)).reshape(rows)
    pos = pos.astype(jnp.float32)
    x2 = x.reshape(rows, d_k)

    # Row tiling over packed rows; pad (rarely needed at real sizes) so the grid divides.
    R2 = pl.cdiv(rows, P)
    TM = min(block_rows, 8 * pl.cdiv(R2, 8))
    R2p = TM * pl.cdiv(R2, TM)
    rows_p = R2p * P
    if rows_p != rows:
        x2 = jnp.pad(x2, ((0, rows_p - rows), (0, 0)))
        pos = jnp.pad(pos, (0, rows_p - rows))

    x_w = x2.reshape(R2p, LW)        # contiguous -> layout-free reshape, lane dense
    pos_w = pos.reshape(R2p, P)

    fmask, rot = _rope_tables(theta, d_k, LW)

    out_w = pl.pallas_call(
        _rope_kernel,
        out_shape=jax.ShapeDtypeStruct((R2p, LW), x.dtype),
        grid=(R2p // TM,),
        in_specs=[
            pl.BlockSpec((P, LW), lambda r: (0, 0)),      # masked freqs (grid-invariant)
            pl.BlockSpec((LW, LW), lambda r: (0, 0)),     # signed swap matrix (grid-invariant)
            pl.BlockSpec((TM, P), lambda r: (r, 0)),      # positions per row tile
            pl.BlockSpec((TM, LW), lambda r: (r, 0)),     # x, lane dense
        ],
        out_specs=pl.BlockSpec((TM, LW), lambda r: (r, 0)),
        compiler_params=pltpu.CompilerParams(
            dimension_semantics=("parallel",),            # shard row tiles across TCs (v7x)
            vmem_limit_bytes=32 * 1024 * 1024,            # explicit budget, safe on v5e/v6e/v7x
        ),
    )(fmask, rot, pos_w, x_w)

    out = out_w.reshape(rows_p, d_k)[:rows]
    return out.reshape(orig_shape)


def _rope_reference(x, token_positions, *, theta, d_k, max_seq_len):
    positions = jnp.arange(max_seq_len, dtype=jnp.float32)
    dim_idx = jnp.arange(0, d_k, 2, dtype=jnp.float32)
    freqs = 1.0 / (theta ** (dim_idx / d_k))
    angles = positions[:, None] * freqs[None, :]
    cos_cached = jnp.cos(angles)
    sin_cached = jnp.sin(angles)
    x_even = x[..., 0::2]
    x_odd = x[..., 1::2]
    c = cos_cached[token_positions]
    s = sin_cached[token_positions]
    xer = x_even * c - x_odd * s
    xor_ = x_even * s + x_odd * c
    out = jnp.zeros_like(x)
    out = out.at[..., 0::2].set(xer)
    out = out.at[..., 1::2].set(xor_)
    return out


if __name__ == "__main__":
    theta = 10000.0
    d_k = 32
    max_seq_len = 64
    seq_len = 8
    batch_dims = (2, 3)

    key = jax.random.PRNGKey(0)
    kx, kp = jax.random.split(key)
    x = jax.random.normal(kx, batch_dims + (seq_len, d_k), dtype=jnp.float32)
    token_positions = jax.random.randint(
        kp, batch_dims + (seq_len,), 0, max_seq_len, dtype=jnp.int32)

    rope_fn = jax.jit(
        lambda a, b: rope_forward(a, b, theta=theta, d_k=d_k, max_seq_len=max_seq_len))
    out = jax.block_until_ready(rope_fn(x, token_positions))

    ref = _rope_reference(x, token_positions, theta=theta, d_k=d_k, max_seq_len=max_seq_len)
    assert out.shape == x.shape and out.dtype == x.dtype
    # Tolerance covers the two-bf16-limb MXU swap (error ~ |x| * 2^-16) on top of f32 math.
    assert jnp.allclose(out, ref, atol=2e-4, rtol=2e-4), float(jnp.max(jnp.abs(out - ref)))

    print("KERNEL_OK")
</pallas_src>

<mosaic_0001>
module attributes {stable_mosaic.version = 11 : i64} {
  func.func @_rope_kernel(%arg0: i32, %arg1: memref<4x128xf32, #tpu.memory_space<vmem>>, %arg2: memref<128x128xbf16, #tpu.memory_space<vmem>>, %arg3: memref<16x4xf32, #tpu.memory_space<vmem>>, %arg4: memref<16x128xf32, #tpu.memory_space<vmem>>, %arg5: memref<16x128xf32, #tpu.memory_space<vmem>>) attributes {dimension_semantics = [#tpu.dimension_semantics<parallel>], iteration_bounds = array<i64: 1>, scalar_prefetch = 0 : i64, scratch_operands = 0 : i64, tpu.core_type = #tpu.core_type<tc>, window_params = [{pipeline_mode = #tpu.pipeline_mode<synchronous>, transform_indices = @transform_0, window_bounds = array<i64: 4, 128>}, {pipeline_mode = #tpu.pipeline_mode<synchronous>, transform_indices = @transform_1, window_bounds = array<i64: 128, 128>}, {transform_indices = @transform_2, window_bounds = array<i64: 16, 4>}, {transform_indices = @transform_3, window_bounds = array<i64: 16, 128>}, {transform_indices = @transform_4, window_bounds = array<i64: 16, 128>}]} {
    %c0 = arith.constant 0 : index
    %c0_0 = arith.constant 0 : index
    %0 = vector.load %arg3[%c0, %c0_0] : memref<16x4xf32, #tpu.memory_space<vmem>>, vector<16x1xf32>
    %c0_1 = arith.constant 0 : index
    %c0_2 = arith.constant 0 : index
    %1 = vector.load %arg1[%c0_1, %c0_2] : memref<4x128xf32, #tpu.memory_space<vmem>>, vector<1x128xf32>
    %2 = vector.broadcast %0 : vector<16x1xf32> to vector<16x128xf32>
    %3 = vector.broadcast %1 : vector<1x128xf32> to vector<16x128xf32>
    %4 = arith.mulf %2, %3 : vector<16x128xf32>
    %c0_3 = arith.constant 0 : index
    %c1 = arith.constant 1 : index
    %5 = vector.load %arg3[%c0_3, %c1] : memref<16x4xf32, #tpu.memory_space<vmem>>, vector<16x1xf32>
    %c1_4 = arith.constant 1 : index
    %c0_5 = arith.constant 0 : index
    %6 = vector.load %arg1[%c1_4, %c0_5] : memref<4x128xf32, #tpu.memory_space<vmem>>, vector<1x128xf32>
    %7 = vector.broadcast %5 : vector<16x1xf32> to vector<16x128xf32>
    %8 = vector.broadcast %6 : vector<1x128xf32> to vector<16x128xf32>
    %9 = arith.mulf %7, %8 : vector<16x128xf32>
    %10 = arith.addf %4, %9 : vector<16x128xf32>
    %c0_6 = arith.constant 0 : index
    %c2 = arith.constant 2 : index
    %11 = vector.load %arg3[%c0_6, %c2] : memref<16x4xf32, #tpu.memory_space<vmem>>, vector<16x1xf32>
    %c2_7 = arith.constant 2 : index
    %c0_8 = arith.constant 0 : index
    %12 = vector.load %arg1[%c2_7, %c0_8] : memref<4x128xf32, #tpu.memory_space<vmem>>, vector<1x128xf32>
    %13 = vector.broadcast %11 : vector<16x1xf32> to vector<16x128xf32>
    %14 = vector.broadcast %12 : vector<1x128xf32> to vector<16x128xf32>
    %15 = arith.mulf %13, %14 : vector<16x128xf32>
    %16 = arith.addf %10, %15 : vector<16x128xf32>
    %c0_9 = arith.constant 0 : index
    %c3 = arith.constant 3 : index
    %17 = vector.load %arg3[%c0_9, %c3] : memref<16x4xf32, #tpu.memory_space<vmem>>, vector<16x1xf32>
    %c3_10 = arith.constant 3 : index
    %c0_11 = arith.constant 0 : index
    %18 = vector.load %arg1[%c3_10, %c0_11] : memref<4x128xf32, #tpu.memory_space<vmem>>, vector<1x128xf32>
    %19 = vector.broadcast %17 : vector<16x1xf32> to vector<16x128xf32>
    %20 = vector.broadcast %18 : vector<1x128xf32> to vector<16x128xf32>
    %21 = arith.mulf %19, %20 : vector<16x128xf32>
    %22 = arith.addf %16, %21 : vector<16x128xf32>
    %23 = math.cos %22 : vector<16x128xf32>
    %24 = math.sin %22 : vector<16x128xf32>
    %c0_12 = arith.constant 0 : index
    %c0_13 = arith.constant 0 : index
    %25 = vector.load %arg4[%c0_12, %c0_13] : memref<16x128xf32, #tpu.memory_space<vmem>>, vector<16x128xf32>
    %c0_14 = arith.constant 0 : index
    %c0_15 = arith.constant 0 : index
    %26 = vector.load %arg2[%c0_14, %c0_15] : memref<128x128xbf16, #tpu.memory_space<vmem>>, vector<128x128xbf16>
    %27 = arith.truncf %25 : vector<16x128xf32> to vector<16x128xbf16>
    %cst = arith.constant dense<0.000000e+00> : vector<16x128xf32>
    %28 = tpu.matmul %27, %26, %cst {dimension_numbers = #tpu.dot_dimension_numbers<[1], [0], [0], [1], [0, 0, 1, 1], [], []>} : vector<16x128xbf16>, vector<128x128xbf16>, vector<16x128xf32> -> vector<16x128xf32>
    %29 = arith.extf %27 : vector<16x128xbf16> to vector<16x128xf32>
    %30 = arith.subf %25, %29 : vector<16x128xf32>
    %31 = arith.truncf %30 : vector<16x128xf32> to vector<16x128xbf16>
    %cst_16 = arith.constant dense<0.000000e+00> : vector<16x128xf32>
    %32 = tpu.matmul %31, %26, %cst_16 {dimension_numbers = #tpu.dot_dimension_numbers<[1], [0], [0], [1], [0, 0, 1, 1], [], []>} : vector<16x128xbf16>, vector<128x128xbf16>, vector<16x128xf32> -> vector<16x128xf32>
    %33 = arith.addf %28, %32 : vector<16x128xf32>
    %34 = arith.mulf %25, %23 : vector<16x128xf32>
    %35 = arith.mulf %33, %24 : vector<16x128xf32>
    %36 = arith.addf %34, %35 : vector<16x128xf32>
    %c0_17 = arith.constant 0 : index
    %c0_18 = arith.constant 0 : index
    %37 = vector.load %arg5[%c0_17, %c0_18] : memref<16x128xf32, #tpu.memory_space<vmem>>, vector<16x128xf32>
    tpu.vector_store %arg5[%c0_17, %c0_18], %36 {strides = array<i32>} : memref<16x128xf32, #tpu.memory_space<vmem>>, vector<16x128xf32>,
    return
  }
  func.func @transform_0(%arg0: i32) -> (i32, i32) {
    %c0_i32 = arith.constant 0 : i32
    %c0_i32_0 = arith.constant 0 : i32
    %c0_i32_1 = arith.constant 0 : i32
    return %c0_i32, %c0_i32_0 : i32, i32
  }
  func.func @transform_1(%arg0: i32) -> (i32, i32) {
    %c0_i32 = arith.constant 0 : i32
    %c0_i32_0 = arith.constant 0 : i32
    %c0_i32_1 = arith.constant 0 : i32
    return %c0_i32, %c0_i32_0 : i32, i32
  }
  func.func @transform_2(%arg0: i32) -> (i32, i32) {
    %c0_i32 = arith.constant 0 : i32
    %c0_i32_0 = arith.constant 0 : i32
    return %arg0, %c0_i32 : i32, i32
  }
  func.func @transform_3(%arg0: i32) -> (i32, i32) {
    %c0_i32 = arith.constant 0 : i32
    %c0_i32_0 = arith.constant 0 : i32
    return %arg0, %c0_i32 : i32, i32
  }
  func.func @transform_4(%arg0: i32) -> (i32, i32) {
    %c0_i32 = arith.constant 0 : i32
    %c0_i32_0 = arith.constant 0 : i32
    return %arg0, %c0_i32 : i32, i32
  }
}

</mosaic_0001>

<bundles_post_ra>
// kernel: _lambda_.1
= control target key start
LH: loop header
LB: loop body
LE: loop exit
PB: predicated region body
PF: predicated region fallthrough
CT: control target
= control target key end

     0   :  { %v798_v0 = vmov 1   ;;  %v799_v1 = vmov 0   ;;  %v800_v4 = vmov 0.0   ;;  %vm801_vm0 = vmmov 0   ;;  %s975_s2 = inlined_call_operand.vmem [shape: f32[16,4], index: 2, kind: input, shape index: {}]   ;;  %s976_s1 = inlined_call_operand.vmem [shape: bf16[128,128], index: 1, kind: input, shape index: {}]   ;;  %s977_s3 = inlined_call_operand.vmem [shape: f32[16,128], index: 3, kind: input, shape index: {}]   ;;  %s978_s0 = inlined_call_operand.vmem [shape: f32[4,128], index: 0, kind: input, shape index: {}]   ;;  %s979_s4 = inlined_call_operand.vmem [shape: f32[16,128], index: 4, kind: output, shape index: {}]  }
   0x1   :  { %777 = vset.pattern.permute.xlu1 %v798_v0  ;;  %776 = vset.pattern.permute.xlu0 %v799_v1  ;;  %v18_v2 = vld [vmem:[%s975_s2] sm:$0xff]  ;;  %v19_v5 = vld [vmem:[%s975_s2 + $0x8] sm:$0xff]  ;;  %v784_v7 = vld [vmem:[%s976_s1 + $0x10] sm:$0xff]   ;;  %v802_v8 = vmov 2   ;;  %v803_v10 = vmov 3  }
   0x2   :  { %39 = vperm.xlu1 %777, %v18_v2   ;;  %23 = vperm.xlu0 %776, %v18_v2   ;;  %v782_v3 = vld [vmem:[%s976_s1] sm:$0xff]   ;;  %v783_v6 = vld [vmem:[%s976_s1 + $0x8] sm:$0xff]   ;;  %v785_v9 = vld [vmem:[%s976_s1 + $0x18] sm:$0xff]  }
   0x3   :  { %714 = vmatprep.subr.bf16.mxu1 %v800_v4  ;;  %734 = vmatprep.subr.bf16.mxu0 %v800_v4  ;;  %v786_v11 = vld [vmem:[%s976_s1 + $0x20] sm:$0xff]   ;;  %v864_v13 = vld [vmem:[%s977_s3 + $0x8] sm:$0xff]  ;;  %v788_v18 = vld [vmem:[%s976_s1 + $0x30] sm:$0xff]  }
   0x4   :  { %715 = vmatpush3.bf16.msra.mxu1 %v782_v3  ;;  %735 = vmatpush3.bf16.msra.mxu0 %v782_v3  ;;  %v859_v12 = vld [vmem:[%s977_s3] sm:$0xff]  ;;  %v787_v15 = vld [vmem:[%s976_s1 + $0x28] sm:$0xff]   ;;  %v789_v21 = vld [vmem:[%s976_s1 + $0x38] sm:$0xff]  }
   0x5   :  { %716 = vmatprep.subr.bf16.mxu1 %v800_v4  ;;  %736 = vmatprep.subr.bf16.mxu0 %v800_v4  ;;  %v520_v14 = vpack.c.bf16 %v864_v13, %v859_v12  ;;  %v669_v25 = vld [vmem:[%s978_s0 + $0x1] ss:$0 sm:$0xff]  ;;  %v668_v26 = vld [vmem:[%s978_s0] ss:$0 sm:$0xff]  ;;  %v670_v33 = vld [vmem:[%s978_s0 + $0x2] ss:$0 sm:$0xff] }
   0x6   :  { %43 = vperm.xlu1 %777, %v19_v5   ;;  %28 = vperm.xlu0 %776, %v19_v5   ;;  %v671_v40 = vld [vmem:[%s978_s0 + $0x3] ss:$0 sm:$0xff] }
   0x7   :  { %730 = vmatprep.mubr.msk.bf16.mxu1 %vm801_vm0, %v800_v4  ;;  %750 = vmatprep.mubr.msk.bf16.mxu0 %vm801_vm0, %v800_v4  ;;  %v521_v16 = vunpack.c.l.bf16 %v520_v14  ;;  %v522_v17 = vunpack.c.h.bf16 %v520_v14 }
   0x8   :  { %717 = vmatpush3.bf16.msra.mxu1 %v783_v6  ;;  %737 = vmatpush3.bf16.msra.mxu0 %v783_v6  ;;  %v804_v6 = vmov 683565275  }
   0x9   :  { %718 = vmatprep.subr.bf16.mxu1 %v800_v4  ;;  %738 = vmatprep.subr.bf16.mxu0 %v800_v4  ;;  %v523_v19 = vsub.f32 %v859_v12, %v521_v16  ;;  %v524_v20 = vsub.f32 %v864_v13, %v522_v17  ;;  %v808_v16 = vmov 920167782  }
   0xa   :  { %779 = vset.pattern.permute.xlu1 %v802_v8  ;;  %778 = vset.pattern.permute.xlu0 %v802_v8  ;;  %v805_v8 = vmov 2475754826  }
   0xb   :  { %60 = vperm.xlu1 %779, %v19_v5   ;;  %56 = vperm.xlu0 %778, %v18_v2   ;;  %v525_v22 = vpack.c.bf16 %v524_v20, %v523_v19 }
   0xc   :  { %719 = vmatpush3.bf16.msra.mxu1 %v784_v7  ;;  %739 = vmatpush3.bf16.msra.mxu0 %v784_v7 }
   0xd   :  { %720 = vmatprep.subr.bf16.mxu1 %v800_v4  ;;  %740 = vmatprep.subr.bf16.mxu0 %v800_v4 }
   0xf   :  { %780 = vset.pattern.permute.xlu1 %v803_v10  ;;  %781 = vset.pattern.permute.xlu0 %v803_v10  ;;  %v806_v10 = vmov 2131351028  }
  0x10   :  { %73 = vperm.xlu1 %780, %v18_v2   ;;  %77 = vperm.xlu0 %781, %v19_v5  }
  0x11   :  { %721 = vmatpush3.bf16.msra.mxu1 %v785_v9  ;;  %741 = vmatpush3.bf16.msra.mxu0 %v785_v9 }
  0x12   :  { %722 = vmatprep.subr.bf16.mxu1 %v800_v4  ;;  %742 = vmatprep.subr.bf16.mxu0 %v800_v4 }
  0x15   :  { %723 = vmatpush3.bf16.msra.mxu1 %v786_v11  ;;  %743 = vmatpush3.bf16.msra.mxu0 %v786_v11 }
  0x16   :  { %724 = vmatprep.subr.bf16.mxu1 %v800_v4  ;;  %744 = vmatprep.subr.bf16.mxu0 %v800_v4 }
  0x19   :  { %725 = vmatpush3.bf16.msra.mxu1 %v787_v15  ;;  %745 = vmatpush3.bf16.msra.mxu0 %v787_v15 }
  0x1a   :  { %726 = vmatprep.subr.bf16.mxu1 %v800_v4  ;;  %746 = vmatprep.subr.bf16.mxu0 %v800_v4 }
  0x1d   :  { %727 = vmatpush3.bf16.msra.mxu1 %v788_v18  ;;  %747 = vmatpush3.bf16.msra.mxu0 %v788_v18 }
  0x1e   :  { %728 = vmatprep.subr.bf16.mxu1 %v800_v4  ;;  %748 = vmatprep.subr.bf16.mxu0 %v800_v4 }
  0x21   :  { %729 = vmatpush3.bf16.msra.mxu1 %v789_v21  ;;  %749 = vmatpush3.bf16.msra.mxu0 %v789_v21 }
  0x24   :  { %731 = vmatmul.mubr.bf16.vlgmr.msra.gmra.mrb[0].mxu1 %v525_v22  ;;  %751 = vmatmul.mubr.bf16.vlgmr.msra.gmra.mrb[0].mxu0 %v520_v14  ;;  %v807_v14 = vmov 2102212464  }
  0x81   :  { %v40_v23 = vpop.permute.xlu1 %39  ;;  %v24_v24 = vpop.permute.xlu0 %23 }
  0x82   :  { %v50_v29 = vmul.f32 %v669_v25, %v40_v23  ;;  %v35_v30 = vmul.f32 %v668_v26, %v24_v24  ;;  %v809_v24 = vmov 1326507024  }
  0x84   :  { %v52_v34 = vadd.f32 %v50_v29, %v35_v30 }
  0x85   :  { %v44_v27 = vpop.permute.xlu1 %43  ;;  %v29_v28 = vpop.permute.xlu0 %28 }
  0x86   :  { %v51_v31 = vmul.f32 %v669_v25, %v44_v27  ;;  %v36_v32 = vmul.f32 %v668_v26, %v29_v28 }
  0x88   :  { %v53_v35 = vadd.f32 %v51_v31, %v36_v32 }
  0x8a   :  { %v61_v36 = vpop.permute.xlu1 %60  ;;  %v57_v37 = vpop.permute.xlu0 %56 }
  0x8b   :  { %v68_v38 = vmul.f32 %v670_v33, %v61_v36  ;;  %v67_v39 = vmul.f32 %v670_v33, %v57_v37 }
  0x8d   :  { %v70_v41 = vadd.f32 %v68_v38, %v53_v35  ;;  %v69_v42 = vadd.f32 %v67_v39, %v52_v34 }
  0x8f   :  { %v74_v43 = vpop.permute.xlu1 %73  ;;  %v78_v44 = vpop.permute.xlu0 %77 }
  0x90   :  { %v84_v45 = vmul.f32 %v671_v40, %v74_v43  ;;  %v85_v46 = vmul.f32 %v671_v40, %v78_v44 }
  0x92   :  { %v891_v47 = vadd.f32 %v84_v45, %v69_v42  ;;  %v893_v48 = vadd.f32 %v85_v46, %v70_v41 }
  0x94   :  { %v88_v49 = vand.u32 2147483647, %v891_v47  ;;  %v91_v50 = vand.u32 2139095040, %v891_v47  ;;  %v191_v51 = vand.u32 2147483647, %v893_v48  ;;  %v194_v52 = vand.u32 2139095040, %v893_v48 }
  0x95   :  { %vm90_vm15 = vcmp.lt.s32.totalorder %v891_v47, 0  ;;  %vm193_vm0 = vcmp.lt.s32.totalorder %v893_v48, 0 }
  0x96   :  { %v92_v53 = vshrl.u32 %v91_v50, 23  ;;  %v95_v54 = vand.u32 8388607, %v88_v49  ;;  %v195_v55 = vshrl.u32 %v194_v52, 23  ;;  %v198_v58 = vand.u32 8388607, %v191_v51 }
  0x98   :  { %v672_v56 = vadd.s32 4294967169, %v92_v53  ;;  %v676_v57 = vadd.s32 4294967169, %v195_v55  ;;  %v96_v60 = vor.u32 8388608, %v95_v54  ;;  %v199_v63 = vor.u32 8388608, %v198_v58 }
  0x9a   :  { %v98_v59 = vadd.s32 1, %v672_v56  ;;  %v201_v61 = vadd.s32 1, %v676_v57  ;;  %v903_v3 = vshll.u32 %v96_v60, 8  ;;  %v905_v18 = vshll.u32 %v199_v63, 8 }
  0x9c   :  { %vm99_vm1 = vcmp.gt.s32.totalorder %v98_v59, 0  ;;  %vm202_vm2 = vcmp.gt.s32.totalorder %v201_v61, 0 }
  0x9d   :  { %v100_v62 = vsel %vm99_vm1, %v98_v59, 0  ;;  %v203_v2 = vsel %vm202_vm2, %v201_v61, 0  ;;  %vm89_vm1 = vcmp.le.f32.partialorder %v88_v49, 0.7853982  ;;  %vm192_vm2 = vcmp.le.f32.partialorder %v191_v51, 0.7853982 }
  0x9e   :  { %v101_v0 = vshrl.u32 %v100_v62, 5  ;;  %v102_v1 = vand.u32 31, %v100_v62  ;;  %v205_v4 = vand.u32 31, %v203_v2  ;;  %v204_v43 = vshrl.u32 %v203_v2, 5 }
  0xa0   :  { %v103_v5 = vsub.s32 32, %v102_v1  ;;  %v105_v7 = vshll.u32 %v804_v6, %v102_v1  ;;  %v108_v9 = vshll.u32 %v805_v8, %v102_v1  ;;  %v111_v11 = vshll.u32 %v806_v10, %v102_v1 }
  0xa1   :  { %v114_v15 = vshll.u32 %v807_v14, %v102_v1  ;;  %v117_v17 = vshll.u32 %v808_v16, %v102_v1  ;;  %vm120_vm3 = vcmp.lt.s32.totalorder %v101_v0, 1  ;;  %vm122_vm4 = vcmp.lt.s32.totalorder %v101_v0, 3 }
  0xa2   :  { %v104_v19 = vshrl.u32 %v804_v6, %v103_v5  ;;  %v106_v20 = vshrl.u32 %v805_v8, %v103_v5  ;;  %v109_v21 = vshrl.u32 %v806_v10, %v103_v5  ;;  %v112_v22 = vshrl.u32 %v807_v14, %v103_v5 }
  0xa3   :  { %v115_v23 = vshrl.u32 %v808_v16, %v103_v5  ;;  %v118_v25 = vshrl.u32 %v809_v24, %v103_v5  ;;  %vm123_vm5 = vcmp.lt.s32.totalorder %v101_v0, 4  ;;  %v206_v29 = vsub.s32 32, %v205_v4 }
  0xa4   :  { %v107_v26 = vor.u32 %v106_v20, %v105_v7  ;;  %v110_v27 = vor.u32 %v109_v21, %v108_v9  ;;  %v113_v28 = vor.u32 %v112_v22, %v111_v11  ;;  %vm121_vm6 = vcmp.lt.s32.totalorder %v101_v0, 2 }
  0xa5   :  { %v116_v30 = vor.u32 %v115_v23, %v114_v15  ;;  %v119_v31 = vor.u32 %v118_v25, %v117_v17  ;;  %v208_v32 = vshll.u32 %v804_v6, %v205_v4  ;;  %v211_v40 = vshll.u32 %v805_v8, %v205_v4 }
  0xa6   :  { %v124_v33 = vsel %vm120_vm3, %v104_v19, %v107_v26  ;;  %v125_v34 = vsel %vm123_vm5, %v113_v28, 2102212464  ;;  %v128_v35 = vsel %vm120_vm3, %v107_v26, %v110_v27  ;;  %v132_v36 = vsel %vm120_vm3, %v110_v27, %v113_v28 }
  0xa7   :  { %v126_v37 = vsel %vm122_vm4, %v110_v27, %v125_v34  ;;  %v129_v38 = vsel %vm123_vm5, %v116_v30, 920167782  ;;  %v133_v39 = vsel %vm123_vm5, %v119_v31, 1326507024  ;;  %v209_v44 = vshrl.u32 %v805_v8, %v206_v29 }
  0xa8   :  { %v130_v41 = vsel %vm122_vm4, %v113_v28, %v129_v38  ;;  %v134_v42 = vsel %vm122_vm4, %v116_v30, %v133_v39  ;;  %v127_v45 = vsel %vm121_vm6, %v124_v33, %v126_v37  ;;  %v212_v52 = vshrl.u32 %v806_v10, %v206_v29 }
  0xa9   :  { %v131_v46 = vsel %vm121_vm6, %v128_v35, %v130_v41  ;;  %v135_v50 = vsel %vm121_vm6, %v132_v36, %v134_v42  ;;  %v210_v57 = vor.u32 %v209_v44, %v208_v32  ;;  %v214_v59 = vshll.u32 %v806_v10, %v205_v4 }
  0xaa   :  { %v917_v53 = vmul.u32.u64.low %v903_v3, %v135_v50  ;;  %v918_v54 = vmul.u32.u64.high %v903_v3, %v135_v50, %v917_v53  ;;  %v921_v55 = vmul.u32.u64.low %v903_v3, %v131_v46  ;;  %v922_v56 = vmul.u32.u64.high %v903_v3, %v131_v46, %v921_v55 }
  0xab   :  { %v213_v58 = vor.u32 %v212_v52, %v211_v40  ;;  %v215_v60 = vshrl.u32 %v807_v14, %v206_v29  ;;  %v217_v61 = vshll.u32 %v807_v14, %v205_v4  ;;  %v218_v62 = vshrl.u32 %v808_v16, %v206_v29 }
  0xac   :  { %v220_v63 = vshll.u32 %v808_v16, %v205_v4  ;;  %v221_v1 = vshrl.u32 %v809_v24, %v206_v29  ;;  %v143_v0 = vmul.u32 %v903_v3, %v127_v45  ;;  %v207_v2 = vshrl.u32 %v804_v6, %v206_v29 }
  0xad   :  { %v216_v5 = vor.u32 %v215_v60, %v214_v59  ;;  %vm223_vm7 = vcmp.lt.s32.totalorder %v204_v43, 1  ;;  %vm145_vm8 = vc.u32 %v918_v54, %v921_v55  ;;  %v146_v7 = vadd.s32 1, %v922_v56 }
  0xae   :  { %v219_v8 = vor.u32 %v218_v62, %v217_v61  ;;  %vm225_vm9 = vcmp.lt.s32.totalorder %v204_v43, 3  ;;  %v222_v9 = vor.u32 %v221_v1, %v220_v63  ;;  %vm224_vm10 = vcmp.lt.s32.totalorder %v204_v43, 2 }
  0xaf   :  { %vm226_vm11 = vcmp.lt.s32.totalorder %v204_v43, 4  ;;  %v231_v10 = vsel %vm223_vm7, %v210_v57, %v213_v58  ;;  %v147_v11 = vsel %vm145_vm8, %v146_v7, %v922_v56  ;;  %v235_v3 = vsel %vm223_vm7, %v213_v58, %v216_v5 }
  0xb0   :  { %v228_v4 = vsel %vm226_vm11, %v216_v5, 2102212464  ;;  %v232_v14 = vsel %vm226_vm11, %v219_v8, 920167782  ;;  %v148_v6 = vadd.s32 %v147_v11, %v143_v0  ;;  %v236_v16 = vsel %vm226_vm11, %v222_v9, 1326507024 }
  0xb1   :  { %v233_v15 = vsel %vm225_vm9, %v216_v5, %v232_v14  ;;  %v227_v17 = vsel %vm223_vm7, %v207_v2, %v210_v57  ;;  %v229_v19 = vsel %vm225_vm9, %v213_v58, %v228_v4  ;;  %v237_v21 = vsel %vm225_vm9, %v219_v8, %v236_v16 }
  0xb2   :  { %v234_v20 = vsel %vm224_vm10, %v231_v10, %v233_v15  ;;  %v149_v22 = vadd.s32 536870912, %v148_v6  ;;  %v238_v23 = vsel %vm224_vm10, %v235_v3, %v237_v21  ;;  %v230_v29 = vsel %vm224_vm10, %v227_v17, %v229_v19 }
  0xb3   :  { %v934_v24 = vmul.u32.u64.low %v905_v18, %v234_v20  ;;  %v935_v25 = vmul.u32.u64.high %v905_v18, %v234_v20, %v934_v24  ;;  %v938_v26 = vmul.u32.u64.low %v905_v18, %v238_v23  ;;  %v939_v27 = vmul.u32.u64.high %v905_v18, %v238_v23, %v938_v26 }
  0xb4   :  { %v941_v28 = vshrl.u32 %v149_v22, 30  ;;  %v246_v32 = vmul.u32 %v905_v18, %v230_v29  ;;  %v144_v46 = vadd.s32 %v921_v55, %v918_v54 }
  0xb5   :  { %v249_v31 = vadd.s32 1, %v935_v25  ;;  %vm248_vm12 = vc.u32 %v939_v27, %v934_v24  ;;  %v247_v0 = vadd.s32 %v934_v24, %v939_v27 }
  0xb6   :  { %v151_v30 = vshll.u32 %v941_v28, 30  ;;  %v174_v22 = vsub.s32 4, %v941_v28 }
  0xb7   :  { %v250_v34 = vsel %vm248_vm12, %v249_v31, %v935_v25 }
  0xb8   :  { %v152_v33 = vsub.s32 %v148_v6, %v151_v30  ;;  %v251_v35 = vadd.s32 %v250_v34, %v246_v32  ;;  %v175_v24 = vsel %vm90_vm15, %v174_v22, %v941_v28 }
  0xb9   :  { %v177_v25 = vsel %vm89_vm1, 0, %v175_v24 }
  0xba   :  { %v154_v36 = vsub.s32 0, %v152_v33  ;;  %v252_v37 = vadd.s32 536870912, %v251_v35  ;;  %v387_v30 = vadd.s32 3, %v177_v25  ;;  %v181_v32 = vand.u32 3, %v177_v25 }
  0xbc   :  { %v673_v38 = vmin.u32 %v154_v36, %v152_v33  ;;  %v253_v39 = vshrl.u32 %v252_v37, 30  ;;  %v388_v36 = vand.u32 3, %v387_v30  ;;  %vm183_vm3 = vcmp.eq.s32.totalorder %v181_v32, 0 }
  0xbd   :  { %vm186_vm4 = vcmp.eq.s32.totalorder %v181_v32, 2  ;;  %vm182_vm5 = vcmp.lt.s32.totalorder %v181_v32, 2 }
  0xbe   :  { %v156_v40 = vclz %v673_v38  ;;  %v254_v41 = vshll.u32 %v253_v39, 30  ;;  %v277_v23 = vsub.s32 4, %v253_v39  ;;  %vm390_vm6 = vcmp.eq.s32.totalorder %v388_v36, 0 }
  0xbf   :  { %vm393_vm7 = vcmp.eq.s32.totalorder %v388_v36, 2  ;;  %vm389_vm12 = vcmp.lt.s32.totalorder %v388_v36, 2 }
  0xc0   :  { %v674_v42 = vadd.s32 4294967294, %v156_v40  ;;  %v255_v43 = vsub.s32 %v251_v35, %v254_v41  ;;  %v278_v49 = vsel %vm193_vm0, %v277_v23, %v253_v39 }
  0xc1   :  { %v280_v27 = vsel %vm192_vm2, 0, %v278_v49 }
  0xc2   :  { %vm675_vm13 = vcmp.lt.s32.totalorder %v674_v42, 0  ;;  %v257_v45 = vsub.s32 0, %v255_v43  ;;  %v284_v37 = vand.u32 3, %v280_v27 }
  0xc3   :  { %v159_v44 = vsel %vm675_vm13, 0, %v674_v42 }
  0xc4   :  { %v160_v18 = vsub.s32 32, %v159_v44  ;;  %v164_v50 = vsub.s32 4294967266, %v159_v44  ;;  %v677_v52 = vmin.u32 %v257_v45, %v255_v43  ;;  %v161_v58 = vshll.u32 %v152_v33, %v159_v44 }
  0xc5   :  { %v491_v33 = vadd.s32 3, %v280_v27  ;;  %vm286_vm8 = vcmp.eq.s32.totalorder %v284_v37, 0  ;;  %vm289_vm9 = vcmp.eq.s32.totalorder %v284_v37, 2  ;;  %vm285_vm13 = vcmp.lt.s32.totalorder %v284_v37, 2 }
  0xc6   :  { %v162_v53 = vshrl.u32 %v144_v46, %v160_v18  ;;  %v165_v56 = vadd.s32 127, %v164_v50  ;;  %v259_v57 = vclz %v677_v52 }
  0xc7   :  { %v492_v41 = vand.u32 3, %v491_v33 }
  0xc8   :  { %v166_v59 = vshll.u32 %v165_v56, 23  ;;  %v678_v60 = vadd.s32 4294967294, %v259_v57  ;;  %v163_v61 = vor.u32 %v162_v53, %v161_v58 }
  0xc9   :  { %vm494_vm10 = vcmp.eq.s32.totalorder %v492_v41, 0  ;;  %vm497_vm11 = vcmp.eq.s32.totalorder %v492_v41, 2 }
  0xca   :  { %v167_v62 = vor.u32 4788187, %v166_v59  ;;  %vm679_vm14 = vcmp.lt.s32.totalorder %v678_v60, 0  ;;  %v170_v7 = vcvt.s32.f32 %v163_v61 }
  0xcb   :  { %v262_v1 = vsel %vm679_vm14, 0, %v678_v60  ;;  %vm180_vm14 = vweird.f32 %v891_v47 }
  0xcc   :  { %v168_v63 = vand.u32 2147483647, %v167_v62  ;;  %v263_v2 = vsub.s32 32, %v262_v1  ;;  %v267_v5 = vsub.s32 4294967266, %v262_v1  ;;  %v264_v54 = vshll.u32 %v255_v43, %v262_v1 }
  0xce   :  { %v265_v55 = vshrl.u32 %v247_v0, %v263_v2  ;;  %v268_v8 = vadd.s32 127, %v267_v5  ;;  %v171_v9 = vmul.f32 %v170_v7, %v168_v63 }
  0xd0   :  { %v266_v10 = vor.u32 %v265_v55, %v264_v54  ;;  %v269_v11 = vshll.u32 %v268_v8, 23  ;;  %v172_v14 = vxor.u32 2147483648, %v171_v9 }
  0xd2   :  { %v270_v4 = vor.u32 4788187, %v269_v11  ;;  %v273_v6 = vcvt.s32.f32 %v266_v10  ;;  %v173_v16 = vsel %vm90_vm15, %v172_v14, %v171_v9  ;;  %vm493_vm15 = vcmp.lt.s32.totalorder %v492_v41, 2 }
  0xd3   :  { %v176_v20 = vsel %vm89_vm1, %v891_v47, %v173_v16 }
  0xd4   :  { %v271_v3 = vand.u32 2147483647, %v270_v4  ;;  %790 = vcosq.f32 %v176_v20 }
  0xd5   :  { %792 = vsinq.f32 %v176_v20 }
  0xd6   :  { %v274_v15 = vmul.f32 %v273_v6, %v271_v3 }
  0xd8   :  { %v275_v17 = vxor.u32 2147483648, %v274_v15 }
  0xda   :  { %v276_v19 = vsel %vm193_vm0, %v275_v17, %v274_v15  ;;  %vm283_vm0 = vweird.f32 %v893_v48 }
  0xdb   :  { %v279_v21 = vsel %vm192_vm2, %v893_v48, %v276_v19 }
  0xdc   :  { %794 = vcosq.f32 %v279_v21 }
  0xdd   :  { %796 = vsinq.f32 %v279_v21 }
  0xde   :  { %v791_v26 = vpop.eup %790 }
  0xdf   :  { %v793_v29 = vpop.eup %792  ;;  %v187_v35 = vxor.u32 2147483648, %v791_v26 }
  0xe0   :  { %v184_v34 = vxor.u32 2147483648, %v793_v29 }
  0xe1   :  { %v188_v39 = vsel %vm186_vm4, %v187_v35, %v793_v29  ;;  %v395_v43 = vsel %vm393_vm7, %v187_v35, %v793_v29 }
  0xe2   :  { %v185_v28 = vsel %vm183_vm3, %v791_v26, %v184_v34  ;;  %v392_v42 = vsel %vm390_vm6, %v791_v26, %v184_v34 }
  0xe3   :  { %v189_v46 = vsel %vm182_vm5, %v185_v28, %v188_v39  ;;  %v396_v52 = vsel %vm389_vm12, %v392_v42, %v395_v43 }
  0xe4   :  { %v190_v57 = vsel %vm180_vm14, nan, %v189_v46  ;;  %v397_v63 = vsel %vm180_vm14, nan, %v396_v52 }
  0xe5   :  { %v656_v5 = vmul.f32 %v859_v12, %v190_v57 }
  0xe6   :  { %v795_v51 = vpop.eup %794 }
  0xe7   :  { %v797_v31 = vpop.eup %796  ;;  %v290_v40 = vxor.u32 2147483648, %v795_v51 }
  0xe8   :  { %v287_v38 = vxor.u32 2147483648, %v797_v31 }
  0xe9   :  { %v291_v45 = vsel %vm289_vm9, %v290_v40, %v797_v31  ;;  %v499_v50 = vsel %vm497_vm11, %v290_v40, %v797_v31 }
  0xea   :  { %v288_v44 = vsel %vm286_vm8, %v795_v51, %v287_v38  ;;  %v496_v18 = vsel %vm494_vm10, %v795_v51, %v287_v38 }
  0xeb   :  { %v292_v53 = vsel %vm285_vm13, %v288_v44, %v291_v45  ;;  %v500_v62 = vsel %vm493_vm15, %v496_v18, %v499_v50 }
  0xec   :  { %v293_v0 = vsel %vm283_vm0, nan, %v292_v53  ;;  %v501_v8 = vsel %vm283_vm0, nan, %v500_v62 }
  0xed   :  { %v657_v10 = vmul.f32 %v864_v13, %v293_v0 }
  0xf7   :  { %v608_v56 = vpop.f32.mrb[0].mxu1  ;;  %v649_v58 = vpop.f32.mrb[0].mxu0 }
  0xf8   :  { %v650_v59 = vadd.f32 %v649_v58, %v608_v56  ;;  %v732_v60 = vpop.f32.mrb[1].mxu1  ;;  %v752_v61 = vpop.f32.mrb[1].mxu0 }
  0xf9   :  { %v611_v1 = vpop.f32.mrb[2].mxu1  ;;  %v652_v2 = vpop.f32.mrb[2].mxu0 }
  0xfa   :  { %v658_v7 = vmul.f32 %v650_v59, %v397_v63  ;;  %v653_v47 = vadd.f32 %v652_v2, %v611_v1  ;;  %v733_v54 = vpop.f32.mrb[3].mxu1  ;;  %v753_v55 = vpop.f32.mrb[3].mxu0 }
  0xfc   :  { %v660_v9 = vadd.f32 %v658_v7, %v656_v5  ;;  %v659_v11 = vmul.f32 %v653_v47, %v501_v8 }
  0xfe   :  { %662 = vst [vmem:[%s979_s4] sm:$0xff] %v660_v9  ;;  %v661_v48 = vadd.f32 %v659_v11, %v657_v10 }
 0x100   :  { %663 = vst [vmem:[%s979_s4 + $0x8] sm:$0xff] %v661_v48 }

</bundles_post_ra>
